<compile_context>
chip_gen: v6e
topology: v6e:2x2x1
jax: 0.10.0
libtpu: 0.0.40
codegen_flags: <defaults>
</compile_context>

<pallas_src>
import numpy as np

import jax
import jax.numpy as jnp
from jax.experimental import pallas as pl
from jax.experimental.pallas import tpu as pltpu


# ----------------------------------------------------------------------------
# Fused matmul + bias Pallas kernel (bf16 MXU inputs, f32 accumulation)
# ----------------------------------------------------------------------------
def _matmul_bias_kernel(a_ref, b_ref, bias_ref, o_ref, acc_ref):
    k = pl.program_id(2)

    @pl.when(k == 0)
    def _():
        acc_ref[...] = jnp.zeros_like(acc_ref)

    acc_ref[...] += jnp.dot(a_ref[...], b_ref[...],
                            preferred_element_type=jnp.float32)

    @pl.when(k == pl.num_programs(2) - 1)
    def _():
        o_ref[...] = (acc_ref[...] + bias_ref[...]).astype(o_ref.dtype)


def _round_up(x, m):
    return ((x + m - 1) // m) * m


def _choose_tile(size, preferred, quantum):
    """Largest multiple of `quantum` that divides `size`, capped near `preferred`."""
    best = quantum
    t = quantum
    cap = max(preferred, quantum)
    while t <= min(size, cap):
        if size % t == 0:
            best = t
        t += quantum
    return best


def pallas_matmul_bias(a, b, bias=None, *, tm=256, tn=256, tk=512):
    """(M, K) @ (K, N) + bias[None, :] -> (M, N) f32 on the MXU.

    Operands are cast to bf16 (f32 accumulation in VMEM scratch); the bias
    row is added once in the epilogue of the last K step.
    """
    M, K = a.shape
    K2, N = b.shape
    assert K == K2
    pM = _round_up(M, 16)            # bf16 sublane packing for the A tiles
    pK = _round_up(K, 128)
    pN = _round_up(N, 128)
    tm = _choose_tile(pM, tm, 16)
    tk = _choose_tile(pK, tk, 128)   # tk always divides pK -> no re-padding of K
    tn = _choose_tile(pN, tn, 128)

    a_p = jnp.pad(a.astype(jnp.bfloat16), ((0, pM - M), (0, pK - K)))
    b_p = jnp.pad(b.astype(jnp.bfloat16), ((0, pK - K), (0, pN - N)))
    if bias is None:
        bias_p = jnp.zeros((1, pN), jnp.float32)
    else:
        bias_p = jnp.pad(bias.reshape(1, N).astype(jnp.float32),
                         ((0, 0), (0, pN - N)))

    out = pl.pallas_call(
        _matmul_bias_kernel,
        out_shape=jax.ShapeDtypeStruct((pM, pN), jnp.float32),
        grid_spec=pltpu.PrefetchScalarGridSpec(
            num_scalar_prefetch=0,
            grid=(pM // tm, pN // tn, pK // tk),
            in_specs=[
                pl.BlockSpec((tm, tk), lambda i, j, k: (i, k)),
                pl.BlockSpec((tk, tn), lambda i, j, k: (k, j)),
                pl.BlockSpec((1, tn), lambda i, j, k: (0, j)),
            ],
            out_specs=pl.BlockSpec((tm, tn), lambda i, j, k: (i, j)),
            scratch_shapes=[pltpu.VMEM((tm, tn), jnp.float32)],
        ),
        compiler_params=pltpu.CompilerParams(
            dimension_semantics=("parallel", "parallel", "arbitrary"),
            vmem_limit_bytes=48 << 20,
        ),
    )(a_p, b_p, bias_p)
    return out[:M, :N]


# ----------------------------------------------------------------------------
# Static bilinear 2x interpolation matrix (align_corners=True)
# ----------------------------------------------------------------------------
def _bilinear_matrix(n_in):
    """(2*n_in, n_in) dense matrix of bilinear 2x weights, align_corners=True."""
    n_out = 2 * n_in
    u = np.zeros((n_out, n_in), np.float32)
    for p in range(n_out):
        src = p * (n_in - 1) / (n_out - 1) if n_out > 1 else 0.0
        i0 = min(int(np.floor(src)), n_in - 1)
        i1 = min(i0 + 1, n_in - 1)
        f = src - i0
        u[p, i0] += 1.0 - f
        u[p, i1] += f
    return u


# ----------------------------------------------------------------------------
# UpSample block forward
# ----------------------------------------------------------------------------
def upsample_forward(x, skip, w, b):
    """bilinear 2x (align_corners=True) + 1x1 conv (C -> C//2) + channel concat.

    x:    (N, C, H, W)        decoder feature map (NCHW, PyTorch layout)
    skip: (N, C//2, 2H, 2W)   encoder feature map (NCHW)
    w:    (C//2, C)           1x1 conv weight;  b: (C//2,) bias
    returns (N, C, 2H, 2W) in NCHW.
    """
    N, C, H, W = x.shape
    K = C // 2

    # 1x1 conv BEFORE the upsample (linear ops commute; bilinear rows sum to 1
    # so the bias also commutes) -> 4x fewer rows through the MXU.
    x_nhwc = jnp.transpose(x, (0, 2, 3, 1))                       # (N, H, W, C)
    y = pallas_matmul_bias(x_nhwc.reshape(N * H * W, C), w.T, b)  # (N*H*W, K)
    y = y.reshape(N, H, W, K)

    # Bilinear 2x as two dense matmuls against fixed interpolation matrices
    # (no XLA gathers).  H pass: block-diagonal over the (tiny) batch dim so
    # the whole pass is one 2-D Pallas matmul over a free reshape.
    uh = _bilinear_matrix(H)                                      # (2H, H)
    uw = _bilinear_matrix(W)                                      # (2W, W)
    a_h = jnp.asarray(np.kron(np.eye(N, dtype=np.float32), uh))   # (N*2H, N*H)
    y = pallas_matmul_bias(a_h, y.reshape(N * H, W * K))          # (N*2H, W*K)
    y = y.reshape(N, 2 * H, W, K)

    # W pass: put W on the contraction-friendly last axis (one small XLA
    # transpose), then right-multiply by Uw^T.
    y = jnp.transpose(y, (0, 1, 3, 2))                            # (N, 2H, K, W)
    y = pallas_matmul_bias(y.reshape(N * 2 * H * K, W), jnp.asarray(uw.T))
    y = y.reshape(N, 2 * H, K, 2 * W)
    y = jnp.transpose(y, (0, 2, 1, 3))                            # (N, K, 2H, 2W)

    # Channel concat with the encoder skip (pure data movement -> XLA).
    return jnp.concatenate([y, skip], axis=1)                     # (N, C, 2H, 2W)


# ----------------------------------------------------------------------------
# Pure-JAX f32 reference in the original op order (upsample -> conv -> concat)
# ----------------------------------------------------------------------------
def _reference_forward(x, skip, w, b):
    _, _, H, W = x.shape
    uh = jnp.asarray(_bilinear_matrix(H))
    uw = jnp.asarray(_bilinear_matrix(W))
    xu = jnp.einsum('ph,nchw->ncpw', uh, x)
    xu = jnp.einsum('qw,ncpw->ncpq', uw, xu)
    y = jnp.einsum('kc,ncpq->nkpq', w, xu) + b[None, :, None, None]
    return jnp.concatenate([y, skip], axis=1)


if __name__ == "__main__":
    key = jax.random.PRNGKey(0)
    kx, ks, kw, kb = jax.random.split(key, 4)

    # UpSample(channel=128) on a 2x128x16x16 decoder map; skip is 2x64x32x32.
    N, C, H, W = 2, 128, 16, 16
    x = jax.random.normal(kx, (N, C, H, W), jnp.float32)
    skip = jax.random.normal(ks, (N, C // 2, 2 * H, 2 * W), jnp.float32)
    w = jax.random.normal(kw, (C // 2, C), jnp.float32) / np.sqrt(C)
    b = 0.1 * jax.random.normal(kb, (C // 2,), jnp.float32)

    fwd = jax.jit(upsample_forward)
    out = jax.block_until_ready(fwd(x, skip, w, b))
    assert out.shape == (N, C, 2 * H, 2 * W), out.shape
    assert bool(jnp.all(jnp.isfinite(out)))

    # Correctness vs. f32 reference (loose tolerance: bf16 MXU inputs).
    ref = jax.block_until_ready(jax.jit(_reference_forward)(x, skip, w, b))
    np.testing.assert_allclose(np.asarray(out), np.asarray(ref),
                               atol=1e-1, rtol=1e-1)
    print("KERNEL_OK")
</pallas_src>

<mosaic_0001>
module attributes {stable_mosaic.version = 11 : i64} {
  func.func @_matmul_bias_kernel(%arg0: i32, %arg1: i32, %arg2: i32, %arg3: memref<256x128xbf16, #tpu.memory_space<vmem>>, %arg4: memref<128x128xbf16, #tpu.memory_space<vmem>>, %arg5: memref<1x128xf32, #tpu.memory_space<vmem>>, %arg6: memref<256x128xf32, #tpu.memory_space<vmem>>, %arg7: memref<256x128xf32, #tpu.memory_space<vmem>>) attributes {dimension_semantics = [#tpu.dimension_semantics<parallel>, #tpu.dimension_semantics<parallel>, #tpu.dimension_semantics<arbitrary>], iteration_bounds = array<i64: 2, 1, 1>, scalar_prefetch = 0 : i64, scratch_operands = 1 : i64, tpu.core_type = #tpu.core_type<tc>, window_params = [{transform_indices = @transform_0, window_bounds = array<i64: 256, 128>}, {transform_indices = @transform_1, window_bounds = array<i64: 128, 128>}, {transform_indices = @transform_2, window_bounds = array<i64: 1, 128>}, {transform_indices = @transform_3, window_bounds = array<i64: 256, 128>}]} {
    %c0_i32 = arith.constant 0 : i32
    %0 = arith.cmpi eq, %arg2, %c0_i32 : i32
    %1 = arith.extui %0 : i1 to i32
    %c0_i32_0 = arith.constant 0 : i32
    %2 = arith.cmpi ne, %1, %c0_i32_0 : i32
    scf.if %2 {
      %cst_10 = arith.constant 0.000000e+00 : f32
      %12 = vector.broadcast %cst_10 : f32 to vector<256x128xf32>
      %c0_11 = arith.constant 0 : index
      %c0_12 = arith.constant 0 : index
      %13 = vector.load %arg7[%c0_11, %c0_12] : memref<256x128xf32, #tpu.memory_space<vmem>>, vector<256x128xf32>
      tpu.vector_store %arg7[%c0_11, %c0_12], %12 {strides = array<i32>} : memref<256x128xf32, #tpu.memory_space<vmem>>, vector<256x128xf32>,
    } else {
    }
    %c0 = arith.constant 0 : index
    %c0_1 = arith.constant 0 : index
    %3 = vector.load %arg7[%c0, %c0_1] : memref<256x128xf32, #tpu.memory_space<vmem>>, vector<256x128xf32>
    %c0_2 = arith.constant 0 : index
    %c0_3 = arith.constant 0 : index
    %4 = vector.load %arg3[%c0_2, %c0_3] : memref<256x128xbf16, #tpu.memory_space<vmem>>, vector<256x128xbf16>
    %c0_4 = arith.constant 0 : index
    %c0_5 = arith.constant 0 : index
    %5 = vector.load %arg4[%c0_4, %c0_5] : memref<128x128xbf16, #tpu.memory_space<vmem>>, vector<128x128xbf16>
    %cst = arith.constant dense<0.000000e+00> : vector<256x128xf32>
    %6 = tpu.matmul %4, %5, %cst {dimension_numbers = #tpu.dot_dimension_numbers<[1], [0], [0], [1], [0, 0, 1, 1], [], []>} : vector<256x128xbf16>, vector<128x128xbf16>, vector<256x128xf32> -> vector<256x128xf32>
    %7 = arith.addf %3, %6 : vector<256x128xf32>
    %c0_6 = arith.constant 0 : index
    %c0_7 = arith.constant 0 : index
    %8 = vector.load %arg7[%c0_6, %c0_7] : memref<256x128xf32, #tpu.memory_space<vmem>>, vector<256x128xf32>
    tpu.vector_store %arg7[%c0_6, %c0_7], %7 {strides = array<i32>} : memref<256x128xf32, #tpu.memory_space<vmem>>, vector<256x128xf32>,
    %c0_i32_8 = arith.constant 0 : i32
    %9 = arith.cmpi eq, %arg2, %c0_i32_8 : i32
    %10 = arith.extui %9 : i1 to i32
    %c0_i32_9 = arith.constant 0 : i32
    %11 = arith.cmpi ne, %10, %c0_i32_9 : i32
    scf.if %11 {
      %c0_10 = arith.constant 0 : index
      %c0_11 = arith.constant 0 : index
      %12 = vector.load %arg7[%c0_10, %c0_11] : memref<256x128xf32, #tpu.memory_space<vmem>>, vector<256x128xf32>
      %c0_12 = arith.constant 0 : index
      %c0_13 = arith.constant 0 : index
      %13 = vector.load %arg5[%c0_12, %c0_13] : memref<1x128xf32, #tpu.memory_space<vmem>>, vector<1x128xf32>
      %14 = vector.broadcast %13 : vector<1x128xf32> to vector<256x128xf32>
      %15 = arith.addf %12, %14 : vector<256x128xf32>
      %c0_14 = arith.constant 0 : index
      %c0_15 = arith.constant 0 : index
      %16 = vector.load %arg6[%c0_14, %c0_15] : memref<256x128xf32, #tpu.memory_space<vmem>>, vector<256x128xf32>
      tpu.vector_store %arg6[%c0_14, %c0_15], %15 {strides = array<i32>} : memref<256x128xf32, #tpu.memory_space<vmem>>, vector<256x128xf32>,
    } else {
    }
    return
  }
  func.func @transform_0(%arg0: i32, %arg1: i32, %arg2: i32) -> (i32, i32) {
    %c0_i32 = arith.constant 0 : i32
    return %arg0, %arg2 : i32, i32
  }
  func.func @transform_1(%arg0: i32, %arg1: i32, %arg2: i32) -> (i32, i32) {
    %c0_i32 = arith.constant 0 : i32
    return %arg2, %arg1 : i32, i32
  }
  func.func @transform_2(%arg0: i32, %arg1: i32, %arg2: i32) -> (i32, i32) {
    %c0_i32 = arith.constant 0 : i32
    %c0_i32_0 = arith.constant 0 : i32
    return %c0_i32, %arg1 : i32, i32
  }
  func.func @transform_3(%arg0: i32, %arg1: i32, %arg2: i32) -> (i32, i32) {
    %c0_i32 = arith.constant 0 : i32
    return %arg0, %arg1 : i32, i32
  }
}

module attributes {stable_mosaic.version = 11 : i64} {
  func.func @_matmul_bias_kernel(%arg0: i32, %arg1: i32, %arg2: i32, %arg3: memref<64x128xbf16, #tpu.memory_space<vmem>>, %arg4: memref<128x256xbf16, #tpu.memory_space<vmem>>, %arg5: memref<1x256xf32, #tpu.memory_space<vmem>>, %arg6: memref<64x256xf32, #tpu.memory_space<vmem>>, %arg7: memref<64x256xf32, #tpu.memory_space<vmem>>) attributes {dimension_semantics = [#tpu.dimension_semantics<parallel>, #tpu.dimension_semantics<parallel>, #tpu.dimension_semantics<arbitrary>], iteration_bounds = array<i64: 1, 4, 1>, scalar_prefetch = 0 : i64, scratch_operands = 1 : i64, tpu.core_type = #tpu.core_type<tc>, window_params = [{transform_indices = @transform_0, window_bounds = array<i64: 64, 128>}, {transform_indices = @transform_1, window_bounds = array<i64: 128, 256>}, {transform_indices = @transform_2, window_bounds = array<i64: 1, 256>}, {transform_indices = @transform_3, window_bounds = array<i64: 64, 256>}]} {
    %c0_i32 = arith.constant 0 : i32
    %0 = arith.cmpi eq, %arg2, %c0_i32 : i32
    %1 = arith.extui %0 : i1 to i32
    %c0_i32_0 = arith.constant 0 : i32
    %2 = arith.cmpi ne, %1, %c0_i32_0 : i32
    scf.if %2 {
      %cst_10 = arith.constant 0.000000e+00 : f32
      %12 = vector.broadcast %cst_10 : f32 to vector<64x256xf32>
      %c0_11 = arith.constant 0 : index
      %c0_12 = arith.constant 0 : index
      %13 = vector.load %arg7[%c0_11, %c0_12] : memref<64x256xf32, #tpu.memory_space<vmem>>, vector<64x256xf32>
      tpu.vector_store %arg7[%c0_11, %c0_12], %12 {strides = array<i32>} : memref<64x256xf32, #tpu.memory_space<vmem>>, vector<64x256xf32>,
    } else {
    }
    %c0 = arith.constant 0 : index
    %c0_1 = arith.constant 0 : index
    %3 = vector.load %arg7[%c0, %c0_1] : memref<64x256xf32, #tpu.memory_space<vmem>>, vector<64x256xf32>
    %c0_2 = arith.constant 0 : index
    %c0_3 = arith.constant 0 : index
    %4 = vector.load %arg3[%c0_2, %c0_3] : memref<64x128xbf16, #tpu.memory_space<vmem>>, vector<64x128xbf16>
    %c0_4 = arith.constant 0 : index
    %c0_5 = arith.constant 0 : index
    %5 = vector.load %arg4[%c0_4, %c0_5] : memref<128x256xbf16, #tpu.memory_space<vmem>>, vector<128x256xbf16>
    %cst = arith.constant dense<0.000000e+00> : vector<64x256xf32>
    %6 = tpu.matmul %4, %5, %cst {dimension_numbers = #tpu.dot_dimension_numbers<[1], [0], [0], [1], [0, 0, 1, 1], [], []>} : vector<64x128xbf16>, vector<128x256xbf16>, vector<64x256xf32> -> vector<64x256xf32>
    %7 = arith.addf %3, %6 : vector<64x256xf32>
    %c0_6 = arith.constant 0 : index
    %c0_7 = arith.constant 0 : index
    %8 = vector.load %arg7[%c0_6, %c0_7] : memref<64x256xf32, #tpu.memory_space<vmem>>, vector<64x256xf32>
    tpu.vector_store %arg7[%c0_6, %c0_7], %7 {strides = array<i32>} : memref<64x256xf32, #tpu.memory_space<vmem>>, vector<64x256xf32>,
    %c0_i32_8 = arith.constant 0 : i32
    %9 = arith.cmpi eq, %arg2, %c0_i32_8 : i32
    %10 = arith.extui %9 : i1 to i32
    %c0_i32_9 = arith.constant 0 : i32
    %11 = arith.cmpi ne, %10, %c0_i32_9 : i32
    scf.if %11 {
      %c0_10 = arith.constant 0 : index
      %c0_11 = arith.constant 0 : index
      %12 = vector.load %arg7[%c0_10, %c0_11] : memref<64x256xf32, #tpu.memory_space<vmem>>, vector<64x256xf32>
      %c0_12 = arith.constant 0 : index
      %c0_13 = arith.constant 0 : index
      %13 = vector.load %arg5[%c0_12, %c0_13] : memref<1x256xf32, #tpu.memory_space<vmem>>, vector<1x256xf32>
      %14 = vector.broadcast %13 : vector<1x256xf32> to vector<64x256xf32>
      %15 = arith.addf %12, %14 : vector<64x256xf32>
      %c0_14 = arith.constant 0 : index
      %c0_15 = arith.constant 0 : index
      %16 = vector.load %arg6[%c0_14, %c0_15] : memref<64x256xf32, #tpu.memory_space<vmem>>, vector<64x256xf32>
      tpu.vector_store %arg6[%c0_14, %c0_15], %15 {strides = array<i32>} : memref<64x256xf32, #tpu.memory_space<vmem>>, vector<64x256xf32>,
    } else {
    }
    return
  }
  func.func @transform_0(%arg0: i32, %arg1: i32, %arg2: i32) -> (i32, i32) {
    %c0_i32 = arith.constant 0 : i32
    return %arg0, %arg2 : i32, i32
  }
  func.func @transform_1(%arg0: i32, %arg1: i32, %arg2: i32) -> (i32, i32) {
    %c0_i32 = arith.constant 0 : i32
    return %arg2, %arg1 : i32, i32
  }
  func.func @transform_2(%arg0: i32, %arg1: i32, %arg2: i32) -> (i32, i32) {
    %c0_i32 = arith.constant 0 : i32
    %c0_i32_0 = arith.constant 0 : i32
    return %c0_i32, %arg1 : i32, i32
  }
  func.func @transform_3(%arg0: i32, %arg1: i32, %arg2: i32) -> (i32, i32) {
    %c0_i32 = arith.constant 0 : i32
    return %arg0, %arg1 : i32, i32
  }
}

module attributes {stable_mosaic.version = 11 : i64} {
  func.func @_matmul_bias_kernel(%arg0: i32, %arg1: i32, %arg2: i32, %arg3: memref<256x128xbf16, #tpu.memory_space<vmem>>, %arg4: memref<128x128xbf16, #tpu.memory_space<vmem>>, %arg5: memref<1x128xf32, #tpu.memory_space<vmem>>, %arg6: memref<256x128xf32, #tpu.memory_space<vmem>>, %arg7: memref<256x128xf32, #tpu.memory_space<vmem>>) attributes {dimension_semantics = [#tpu.dimension_semantics<parallel>, #tpu.dimension_semantics<parallel>, #tpu.dimension_semantics<arbitrary>], iteration_bounds = array<i64: 16, 1, 1>, scalar_prefetch = 0 : i64, scratch_operands = 1 : i64, tpu.core_type = #tpu.core_type<tc>, window_params = [{transform_indices = @transform_0, window_bounds = array<i64: 256, 128>}, {transform_indices = @transform_1, window_bounds = array<i64: 128, 128>}, {transform_indices = @transform_2, window_bounds = array<i64: 1, 128>}, {transform_indices = @transform_3, window_bounds = array<i64: 256, 128>}]} {
    %c0_i32 = arith.constant 0 : i32
    %0 = arith.cmpi eq, %arg2, %c0_i32 : i32
    %1 = arith.extui %0 : i1 to i32
    %c0_i32_0 = arith.constant 0 : i32
    %2 = arith.cmpi ne, %1, %c0_i32_0 : i32
    scf.if %2 {
      %cst_10 = arith.constant 0.000000e+00 : f32
      %12 = vector.broadcast %cst_10 : f32 to vector<256x128xf32>
      %c0_11 = arith.constant 0 : index
      %c0_12 = arith.constant 0 : index
      %13 = vector.load %arg7[%c0_11, %c0_12] : memref<256x128xf32, #tpu.memory_space<vmem>>, vector<256x128xf32>
      tpu.vector_store %arg7[%c0_11, %c0_12], %12 {strides = array<i32>} : memref<256x128xf32, #tpu.memory_space<vmem>>, vector<256x128xf32>,
    } else {
    }
    %c0 = arith.constant 0 : index
    %c0_1 = arith.constant 0 : index
    %3 = vector.load %arg7[%c0, %c0_1] : memref<256x128xf32, #tpu.memory_space<vmem>>, vector<256x128xf32>
    %c0_2 = arith.constant 0 : index
    %c0_3 = arith.constant 0 : index
    %4 = vector.load %arg3[%c0_2, %c0_3] : memref<256x128xbf16, #tpu.memory_space<vmem>>, vector<256x128xbf16>
    %c0_4 = arith.constant 0 : index
    %c0_5 = arith.constant 0 : index
    %5 = vector.load %arg4[%c0_4, %c0_5] : memref<128x128xbf16, #tpu.memory_space<vmem>>, vector<128x128xbf16>
    %cst = arith.constant dense<0.000000e+00> : vector<256x128xf32>
    %6 = tpu.matmul %4, %5, %cst {dimension_numbers = #tpu.dot_dimension_numbers<[1], [0], [0], [1], [0, 0, 1, 1], [], []>} : vector<256x128xbf16>, vector<128x128xbf16>, vector<256x128xf32> -> vector<256x128xf32>
    %7 = arith.addf %3, %6 : vector<256x128xf32>
    %c0_6 = arith.constant 0 : index
    %c0_7 = arith.constant 0 : index
    %8 = vector.load %arg7[%c0_6, %c0_7] : memref<256x128xf32, #tpu.memory_space<vmem>>, vector<256x128xf32>
    tpu.vector_store %arg7[%c0_6, %c0_7], %7 {strides = array<i32>} : memref<256x128xf32, #tpu.memory_space<vmem>>, vector<256x128xf32>,
    %c0_i32_8 = arith.constant 0 : i32
    %9 = arith.cmpi eq, %arg2, %c0_i32_8 : i32
    %10 = arith.extui %9 : i1 to i32
    %c0_i32_9 = arith.constant 0 : i32
    %11 = arith.cmpi ne, %10, %c0_i32_9 : i32
    scf.if %11 {
      %c0_10 = arith.constant 0 : index
      %c0_11 = arith.constant 0 : index
      %12 = vector.load %arg7[%c0_10, %c0_11] : memref<256x128xf32, #tpu.memory_space<vmem>>, vector<256x128xf32>
      %c0_12 = arith.constant 0 : index
      %c0_13 = arith.constant 0 : index
      %13 = vector.load %arg5[%c0_12, %c0_13] : memref<1x128xf32, #tpu.memory_space<vmem>>, vector<1x128xf32>
      %14 = vector.broadcast %13 : vector<1x128xf32> to vector<256x128xf32>
      %15 = arith.addf %12, %14 : vector<256x128xf32>
      %c0_14 = arith.constant 0 : index
      %c0_15 = arith.constant 0 : index
      %16 = vector.load %arg6[%c0_14, %c0_15] : memref<256x128xf32, #tpu.memory_space<vmem>>, vector<256x128xf32>
      tpu.vector_store %arg6[%c0_14, %c0_15], %15 {strides = array<i32>} : memref<256x128xf32, #tpu.memory_space<vmem>>, vector<256x128xf32>,
    } else {
    }
    return
  }
  func.func @transform_0(%arg0: i32, %arg1: i32, %arg2: i32) -> (i32, i32) {
    %c0_i32 = arith.constant 0 : i32
    return %arg0, %arg2 : i32, i32
  }
  func.func @transform_1(%arg0: i32, %arg1: i32, %arg2: i32) -> (i32, i32) {
    %c0_i32 = arith.constant 0 : i32
    return %arg2, %arg1 : i32, i32
  }
  func.func @transform_2(%arg0: i32, %arg1: i32, %arg2: i32) -> (i32, i32) {
    %c0_i32 = arith.constant 0 : i32
    %c0_i32_0 = arith.constant 0 : i32
    return %c0_i32, %arg1 : i32, i32
  }
  func.func @transform_3(%arg0: i32, %arg1: i32, %arg2: i32) -> (i32, i32) {
    %c0_i32 = arith.constant 0 : i32
    return %arg0, %arg1 : i32, i32
  }
}

</mosaic_0001>

<bundles_post_ra>
// kernel: upsample_forward.4
= control target key start
LH: loop header
LB: loop body
LE: loop exit
PB: predicated region body
PF: predicated region fallthrough
CT: control target
= control target key end

     0   :  { %8 = vsyncpa [#allocation4], 0  ;;  %s1061_s12 = smov 0   ;;  %s1063_s13 = smov 0   ;;  %s1238_s0 = inlined_call_operand.hbm [shape: bf16[64,128], index: 0, kind: input, shape index: {}]   ;;  %s1239_s1 = inlined_call_operand.vmem [shape: bf16[128,1024], index: 1, kind: input, shape index: {}]   ;;  %s1240_s2 = inlined_call_operand.vmem [shape: f32[1,1024], index: 2, kind: input, shape index: {}]   ;;  %s1241_s3 = inlined_call_operand.vmem [shape: f32[64,1024], index: 3, kind: output, shape index: {}]  }
   0x1   :  { %s1065_s14 = smov 0   ;;  %s1067_s15 = smov 0  }
   0x2   :  { %s1069_s16 = smov 0  }
   0x3 LB: > { %s829_s17 = sadd.s32 4294967295, %s1035_s16   ;;  %s29_s18 = sadd.s32 1, %s1031_s15  ;;  %s1035_s16 = sphi %s1069_s16, %s14_s16   ;;  %s1031_s15 = sphi %s1067_s15, %s1250_s15   ;;  %s1027_s14 = sphi %s1065_s14, %s1249_s14   ;;  %s1023_s13 = sphi %s1063_s13, %s1248_s13   ;;  %s1019_s12 = sphi %s1061_s12, %s1247_s12  }
   0x4   : > { %p31_p0 = scmp.ge.s32.totalorder %s29_s18, 4  ;;  %s70_s19 = sadd.s32 1, %s1023_s13 }
   0x5   : > { %p77_p1 = scmp.ne.s32.totalorder %s1023_s13, %s1019_s12  ;;  %p78_p2 = scmp.eq.s32.totalorder %s1035_s16, 0 }
   0x6   : > { %s1252_s18 = smov (%p31_p0, %s29_s18), 0  ;;  %p135_p4 = scmp.eq.s32.totalorder %s829_s17, 3 }
   0x7   : > { %p1094_p3 = por %p78_p2, %p77_p1  ;;  %s66_s21 = ssub.s32 %s1031_s15, %s1252_s18 }
   0x8   : > { %p831_p5 = scmp.ge.s32.totalorder %s1035_s16, 1  ;;  %p68_p6 = scmp.eq.s32.totalorder %s66_s21, 0 }
   0x9   : > { %p1101_p7 = por %p135_p4, %p77_p1  ;;  %p148_p8 = scmp.lt.s32.totalorder %s1035_s16, 5 }
   0xa   : > { %s1107_s23 = scalar_select %p68_p6, %s1023_s13, %s70_s19  }
   0xb   : > { %s1243_s22 = scalar_select %p1101_p7, 1, 0 }
   0xc   : > { %p1109_p9 = pnand %p831_p5, %p148_p8  ;;  %p1113_p10 = scmp.eq.s32.totalorder %s829_s17, 0 }
   0xd   : > { %s1037_s26 = smov [#allocation3]  }
   0xe   : > { %p889_p11 = pneg %p1109_p9  ;;  %s164_s27 = sshll.u32 %s1037_s26, 4  ;;  %s165_s27 = int_to_ptr.vmem [resolvable:$true] %s164_s27 }
   0xf   : > { %s978_s28 = scalar_lea.vmem %s165_s27, 512  ;;  %p986_p4 = scmp.lt.s32.totalorder %s165_s27, %s165_s27 }
  0x10   : > { %p890_p12 = pnand %p1113_p10, %p889_p11  ;;  %p979_p0 = scmp.ne.s32.totalorder %s165_s27, %s978_s28 }
  0x11   : > { %p987_p5 = scmp.lt.s32.totalorder %s978_s28, %s978_s28 }
  0x12   : > { %p969_p13 = pneg %p890_p12 }
  0x13   : > { %p988_p6 = por %p987_p5, %p986_p4 }
  0x14   : > { %p981_p1 = pnand %p979_p0, %p969_p13 }
  0x16   : > { %p982_p2 = pneg %p981_p1 }
  0x18   : > { %p989_p8 = pnand %p988_p6, %p982_p2 }
  0x1a   : > { %992 = shalt.err (!%p989_p8)
}
  0x1b   : > { %s1038_s29 = smov 64   ;;  %s1039_s30 = smov 4  }
  0x1c   : > { %892 = dma.hbm_to_vmem [thread:$0]  (!%p890_p12), %s1238_s0, 512, %s165_s27, [#allocation4], %s1038_s29, %s1038_s29, %s1039_s30  }
  0x1d   : > { %p833_p7 = scmp.ge.s32.totalorder %s1035_s16, 4 }
  0x1f   : > { %174 = sbr.rel (%p833_p7) target bundleno = 56 (0x38), region = 20 }
  0x24   : > { %177 = sbr.rel (!%p1094_p3) target bundleno = 56 (0x38), region = 24  ;;  %s179_s6 = sand.u32 (%p1094_p3), 1, %s1023_s13  }
  0x25   : > { %s867_s7 = sshll.u32 (%p1094_p3), %s1031_s15, 3  ;;  %s834_s8 = sshll.u32 (%p1094_p3), %s179_s6, 7 }
  0x26   : > { %s1132_s11 = scalar_lea.vmem (%p1094_p3), %s1239_s1, %s867_s7  ;;  %s181_s17 = scalar_lea.vmem (%p1094_p3), [#allocation5], %s834_s8 }
  0x27   : > { %v246_v0 = vld [vmem:[%s1132_s11] sm:$0xff] (%p1094_p3) }
  0x28   : > { %v248_v1 = vld [vmem:[%s1132_s11 + $0x20] sm:$0xff] (%p1094_p3)  ;;  %247 = vst [vmem:[%s181_s17] sm:$0xff] (%p1094_p3), %v246_v0 }
  0x29   : > { %v250_v2 = vld [vmem:[%s1132_s11 + $0x40] sm:$0xff]  ;;  %249 = vst [vmem:[%s181_s17 + $0x8] sm:$0xff] %v248_v1 }
  0x2a   : > { %251 = vst [vmem:[%s181_s17 + $0x10] sm:$0xff] %v250_v2  ;;  %v252_v3 = vld [vmem:[%s1132_s11 + $0x60] sm:$0xff] }
  0x2b   : > { %v254_v4 = vld [vmem:[%s1132_s11 + $0x80] sm:$0xff]  ;;  %253 = vst [vmem:[%s181_s17 + $0x18] sm:$0xff] %v252_v3 }
  0x2c   : > { %v256_v5 = vld [vmem:[%s1132_s11 + $0xa0] sm:$0xff]  ;;  %255 = vst [vmem:[%s181_s17 + $0x20] sm:$0xff] %v254_v4 }
  0x2d   : > { %257 = vst [vmem:[%s181_s17 + $0x28] sm:$0xff] %v256_v5  ;;  %v258_v6 = vld [vmem:[%s1132_s11 + $0xc0] sm:$0xff] }
  0x2e   : > { %v260_v7 = vld [vmem:[%s1132_s11 + $0xe0] sm:$0xff]  ;;  %259 = vst [vmem:[%s181_s17 + $0x30] sm:$0xff] %v258_v6 }
  0x2f   : > { %v262_v8 = vld [vmem:[%s1132_s11 + $0x100] sm:$0xff]  ;;  %261 = vst [vmem:[%s181_s17 + $0x38] sm:$0xff] %v260_v7 }
  0x30   : > { %263 = vst [vmem:[%s181_s17 + $0x40] sm:$0xff] %v262_v8  ;;  %v264_v9 = vld [vmem:[%s1132_s11 + $0x120] sm:$0xff] }
  0x31   : > { %v266_v10 = vld [vmem:[%s1132_s11 + $0x140] sm:$0xff]  ;;  %265 = vst [vmem:[%s181_s17 + $0x48] sm:$0xff] %v264_v9 }
  0x32   : > { %v268_v11 = vld [vmem:[%s1132_s11 + $0x160] sm:$0xff]  ;;  %267 = vst [vmem:[%s181_s17 + $0x50] sm:$0xff] %v266_v10 }
  0x33   : > { %269 = vst [vmem:[%s181_s17 + $0x58] sm:$0xff] %v268_v11  ;;  %v270_v12 = vld [vmem:[%s1132_s11 + $0x180] sm:$0xff] }
  0x34   : > { %v272_v13 = vld [vmem:[%s1132_s11 + $0x1a0] sm:$0xff]  ;;  %271 = vst [vmem:[%s181_s17 + $0x60] sm:$0xff] %v270_v12 }
  0x35   : > { %v274_v14 = vld [vmem:[%s1132_s11 + $0x1c0] sm:$0xff]  ;;  %273 = vst [vmem:[%s181_s17 + $0x68] sm:$0xff] %v272_v13 }
  0x36   : > { %275 = vst [vmem:[%s181_s17 + $0x70] sm:$0xff] %v274_v14  ;;  %v276_v15 = vld [vmem:[%s1132_s11 + $0x1e0] sm:$0xff] }
  0x37   : > { %277 = vst [vmem:[%s181_s17 + $0x78] sm:$0xff] %v276_v15 }
  0x38 PF: > { %294 = sbr.rel (%p1109_p9) target bundleno = 317 (0x13d), region = 66 }
  0x3d   : > { %1014 = dma.done.wait (%p1113_p10), [#allocation4], 512  }
  0x3e   : > { %1016 = vsyncadd (%p1113_p10), [#allocation4], 4294966784  ;;  %s301_s19 = sand.u32 1, %s1019_s12   ;;  %v1040_v16 = vmov 0   ;;  %v963_v33 = vld [vmem:[#allocation3] sm:$0xff]   ;;  %v964_v34 = vld [vmem:[#allocation3 + $0x10] sm:$0xff]   ;;  %v628_v37 = vlaneseq }
  0x3f   : > { %s1157_s20 = sshll.u32 %s301_s19, 7  ;;  %534 = vmatprep.mubr.bf16.mxu0 %v1040_v16  ;;  %554 = vmatprep.mubr.bf16.mxu1 %v1040_v16  ;;  %v965_v35 = vld [vmem:[#allocation3 + $0x8] sm:$0xff]   ;;  %v966_v36 = vld [vmem:[#allocation3 + $0x18] sm:$0xff]   ;;  %s841_s12 = sshll.u32 %s1027_s14, 1 }
  0x40   : > { %s1160_s21 = scalar_lea.vmem [#allocation5], %s1157_s20  ;;  %p331_p3 = scmp.lt.s32.totalorder %s841_s12, 7  ;;  %v629_v38 = vshrl.u32 %v628_v37, 7 }
  0x41   : > { %v939_v17 = vld [vmem:[%s1160_s21 + $0x74] ss:$8 sps:$4 sm:$0xff]   ;;  %v941_v18 = vld [vmem:[%s1160_s21 + $0x70] ss:$8 sps:$4 sm:$0xff]   ;;  %v942_v19 = vld [vmem:[%s1160_s21 + $0x64] ss:$8 sps:$4 sm:$0xff]  }
  0x42   : > { %502 = vmatprep.subr.bf16.mxu0 %v939_v17  ;;  %869 = vmatprep.subr.bf16.mxu1 %v939_v17  ;;  %v944_v20 = vld [vmem:[%s1160_s21 + $0x60] ss:$8 sps:$4 sm:$0xff]   ;;  %v945_v21 = vld [vmem:[%s1160_s21 + $0x54] ss:$8 sps:$4 sm:$0xff]   ;;  %v947_v22 = vld [vmem:[%s1160_s21 + $0x50] ss:$8 sps:$4 sm:$0xff]  }
  0x43   : > { %503 = vmatpush1.bf16.msra.mxu0 %v941_v18  ;;  %877 = vmatpush1.bf16.msra.mxu1 %v941_v18  ;;  %v948_v23 = vld [vmem:[%s1160_s21 + $0x44] ss:$8 sps:$4 sm:$0xff]   ;;  %v950_v24 = vld [vmem:[%s1160_s21 + $0x40] ss:$8 sps:$4 sm:$0xff]   ;;  %v951_v25 = vld [vmem:[%s1160_s21 + $0x34] ss:$8 sps:$4 sm:$0xff]  }
  0x44   : > { %504 = vmatprep.subr.bf16.mxu0 %v942_v19  ;;  %870 = vmatprep.subr.bf16.mxu1 %v942_v19  ;;  %v953_v26 = vld [vmem:[%s1160_s21 + $0x30] ss:$8 sps:$4 sm:$0xff]   ;;  %v954_v27 = vld [vmem:[%s1160_s21 + $0x24] ss:$8 sps:$4 sm:$0xff]   ;;  %v956_v28 = vld [vmem:[%s1160_s21 + $0x20] ss:$8 sps:$4 sm:$0xff]  }
  0x45   : > { %v957_v29 = vld [vmem:[%s1160_s21 + $0x14] ss:$8 sps:$4 sm:$0xff]   ;;  %v959_v30 = vld [vmem:[%s1160_s21 + $0x10] ss:$8 sps:$4 sm:$0xff]   ;;  %v960_v31 = vld [vmem:[%s1160_s21 + $0x4] ss:$8 sps:$4 sm:$0xff]  }
  0x46   : > { %v962_v32 = vld [vmem:[%s1160_s21] ss:$8 sps:$4 sm:$0xff]   ;;  %s1254_s12 = smov (!%p331_p3, %s841_s12), 7  ;;  %v630_v39 = vsub.s32 0, %v629_v38  ;;  %v634_v41 = vsub.s32 1, %v629_v38  ;;  %s1183_s27 = scalar_lea.vmem [#allocation6], %s1157_s20 }
  0x47   : > { %505 = vmatpush1.bf16.msra.mxu0 %v944_v20  ;;  %878 = vmatpush1.bf16.msra.mxu1 %v944_v20  ;;  %s333_s26 = scalar_lea.vmem %s1240_s2, %s1254_s12  ;;  %p1246_p7 = scmp.ne.s32.totalorder %s1243_s22, 0 }
  0x48   : > { %506 = vmatprep.subr.bf16.mxu0 %v945_v21  ;;  %871 = vmatprep.subr.bf16.mxu1 %v945_v21  ;;  %v626_v40 = vld [vmem:[%s333_s26] sm:$0x3]  ;;  %s868_s28 = sshll.u32 (%p1246_p7), %s1027_s14, 4 }
  0x49   : > { %v631_v42 = vrot.slane %v626_v40, %v630_v39  ;;  %v635_v43 = vrot.slane %v626_v40, %v634_v41  ;;  %s682_s4 = scalar_lea.vmem (%p1246_p7), %s1241_s3, %s868_s28 }
  0x4b   : > { %507 = vmatpush1.bf16.msra.mxu0 %v947_v22  ;;  %879 = vmatpush1.bf16.msra.mxu1 %v947_v22 }
  0x4c   : > { %508 = vmatprep.subr.bf16.mxu0 %v948_v23  ;;  %872 = vmatprep.subr.bf16.mxu1 %v948_v23 }
  0x4f   : > { %509 = vmatpush1.bf16.msra.mxu0 %v950_v24  ;;  %880 = vmatpush1.bf16.msra.mxu1 %v950_v24 }
  0x50   : > { %510 = vmatprep.subr.bf16.mxu0 %v951_v25  ;;  %873 = vmatprep.subr.bf16.mxu1 %v951_v25 }
  0x53   : > { %511 = vmatpush1.bf16.msra.mxu0 %v953_v26  ;;  %881 = vmatpush1.bf16.msra.mxu1 %v953_v26 }
  0x54   : > { %512 = vmatprep.subr.bf16.mxu0 %v954_v27  ;;  %874 = vmatprep.subr.bf16.mxu1 %v954_v27 }
  0x57   : > { %513 = vmatpush1.bf16.msra.mxu0 %v956_v28  ;;  %882 = vmatpush1.bf16.msra.mxu1 %v956_v28 }
  0x58   : > { %514 = vmatprep.subr.bf16.mxu0 %v957_v29  ;;  %875 = vmatprep.subr.bf16.mxu1 %v957_v29 }
  0x5b   : > { %515 = vmatpush1.bf16.msra.mxu0 %v959_v30  ;;  %883 = vmatpush1.bf16.msra.mxu1 %v959_v30 }
  0x5c   : > { %516 = vmatprep.subr.bf16.mxu0 %v960_v31  ;;  %876 = vmatprep.subr.bf16.mxu1 %v960_v31 }
  0x5f   : > { %517 = vmatpush1.bf16.msra.mxu0 %v962_v32  ;;  %884 = vmatpush1.bf16.msra.mxu1 %v962_v32 }
  0x62   : > { %535 = vmatmul.mubr.bf16.vlgmr.msra.gmra.mxu0 %v963_v33  ;;  %555 = vmatmul.mubr.bf16.vlgmr.msra.gmra.mxu1 %v964_v34 }
  0x63   : > { %544 = vmatprep.mubr.bf16.mxu0 %v1040_v16  ;;  %564 = vmatprep.mubr.bf16.mxu1 %v1040_v16 }
  0x6a   : > { %545 = vmatmul.mubr.bf16.gmra.mxu0 %v965_v35  ;;  %565 = vmatmul.mubr.bf16.gmra.mxu1 %v966_v36 }
 0x122   : > { %v536_v44 = vpop.f32.mrf.mxu0  ;;  %v556_v45 = vpop.f32.mrf.mxu1 }
 0x123   : > { %v638_v46 = vadd.f32 %v631_v42, %v536_v44  ;;  %v646_v47 = vadd.f32 %v631_v42, %v556_v45 }
 0x124   : > { %v538_v48 = vpop.f32.mrf.mxu0  ;;  %v558_v49 = vpop.f32.mrf.mxu1 }
 0x125   : > { %654 = vst [vmem:[%s1183_s27] sm:$0xff] %v638_v46  ;;  %662 = vst [vmem:[%s1183_s27 + $0x40] sm:$0xff] %v646_v47  ;;  %v639_v50 = vadd.f32 %v635_v43, %v538_v48  ;;  %v647_v51 = vadd.f32 %v635_v43, %v558_v49 }
 0x126   : > { %v540_v52 = vpop.f32.mrf.mxu0  ;;  %v560_v53 = vpop.f32.mrf.mxu1 }
 0x127   : > { %655 = vst [vmem:[%s1183_s27 + $0x8] sm:$0xff] %v639_v50  ;;  %663 = vst [vmem:[%s1183_s27 + $0x48] sm:$0xff] %v647_v51  ;;  %v640_v54 = vadd.f32 %v631_v42, %v540_v52  ;;  %v648_v55 = vadd.f32 %v631_v42, %v560_v53 }
 0x128   : > { %v542_v56 = vpop.f32.mrf.mxu0  ;;  %v562_v57 = vpop.f32.mrf.mxu1 }
 0x129   : > { %656 = vst [vmem:[%s1183_s27 + $0x10] sm:$0xff] %v640_v54  ;;  %664 = vst [vmem:[%s1183_s27 + $0x50] sm:$0xff] %v648_v55  ;;  %v641_v58 = vadd.f32 %v635_v43, %v542_v56  ;;  %v649_v59 = vadd.f32 %v635_v43, %v562_v57 }
 0x12a   : > { %v546_v60 = vpop.f32.mrf.mxu0  ;;  %v566_v61 = vpop.f32.mrf.mxu1 }
 0x12b   : > { %657 = vst [vmem:[%s1183_s27 + $0x18] sm:$0xff] %v641_v58  ;;  %665 = vst [vmem:[%s1183_s27 + $0x58] sm:$0xff] %v649_v59  ;;  %v642_v62 = vadd.f32 %v631_v42, %v546_v60  ;;  %v650_v63 = vadd.f32 %v631_v42, %v566_v61 }
 0x12c   : > { %v548_v0 = vpop.f32.mrf.mxu0  ;;  %v568_v1 = vpop.f32.mrf.mxu1  ;;  %v695_v12 = vld [vmem:[%s1183_s27] sm:$0xff] (%p1246_p7) }
 0x12d   : > { %658 = vst [vmem:[%s1183_s27 + $0x20] sm:$0xff] %v642_v62  ;;  %666 = vst [vmem:[%s1183_s27 + $0x60] sm:$0xff] %v650_v63  ;;  %v643_v2 = vadd.f32 %v635_v43, %v548_v0  ;;  %v651_v3 = vadd.f32 %v635_v43, %v568_v1  ;;  %v711_v20 = vld [vmem:[%s1183_s27 + $0x40] sm:$0xff] (%p1246_p7) }
 0x12e   : > { %v550_v4 = vpop.f32.mrf.mxu0  ;;  %v570_v5 = vpop.f32.mrf.mxu1  ;;  %v697_v13 = vld [vmem:[%s1183_s27 + $0x8] sm:$0xff] (%p1246_p7)  ;;  %696 = vst [vmem:[%s682_s4] sm:$0xff] (%p1246_p7), %v695_v12  ;;  %712 = vst [vmem:[%s682_s4 + $0x100] sm:$0xff] (%p1246_p7), %v711_v20 }
 0x12f   : > { %659 = vst [vmem:[%s1183_s27 + $0x28] sm:$0xff] %v643_v2  ;;  %667 = vst [vmem:[%s1183_s27 + $0x68] sm:$0xff] %v651_v3  ;;  %v644_v6 = vadd.f32 %v631_v42, %v550_v4  ;;  %v652_v7 = vadd.f32 %v631_v42, %v570_v5  ;;  %676 = sbr.rel (!%p1246_p7) target bundleno = 317 (0x13d), region = 86  ;;  %v713_v21 = vld [vmem:[%s1183_s27 + $0x48] sm:$0xff] (%p1246_p7) }
 0x130   : > { %v552_v8 = vpop.f32.mrf.mxu0  ;;  %v572_v9 = vpop.f32.mrf.mxu1  ;;  %v699_v14 = vld [vmem:[%s1183_s27 + $0x10] sm:$0xff] (%p1246_p7)  ;;  %698 = vst [vmem:[%s682_s4 + $0x8] sm:$0xff] (%p1246_p7), %v697_v13  ;;  %714 = vst [vmem:[%s682_s4 + $0x108] sm:$0xff] (%p1246_p7), %v713_v21 }
 0x131   : > { %660 = vst [vmem:[%s1183_s27 + $0x30] sm:$0xff] %v644_v6  ;;  %668 = vst [vmem:[%s1183_s27 + $0x70] sm:$0xff] %v652_v7  ;;  %v645_v10 = vadd.f32 %v635_v43, %v552_v8  ;;  %v653_v11 = vadd.f32 %v635_v43, %v572_v9  ;;  %v715_v22 = vld [vmem:[%s1183_s27 + $0x50] sm:$0xff] (%p1246_p7) }
 0x132   : > { %v701_v15 = vld [vmem:[%s1183_s27 + $0x18] sm:$0xff] (%p1246_p7)  ;;  %700 = vst [vmem:[%s682_s4 + $0x40] sm:$0xff] (%p1246_p7), %v699_v14  ;;  %716 = vst [vmem:[%s682_s4 + $0x140] sm:$0xff] (%p1246_p7), %v715_v22 }
 0x133   : > { %661 = vst [vmem:[%s1183_s27 + $0x38] sm:$0xff] %v645_v10  ;;  %669 = vst [vmem:[%s1183_s27 + $0x78] sm:$0xff] %v653_v11  ;;  %v717_v23 = vld [vmem:[%s1183_s27 + $0x58] sm:$0xff] (%p1246_p7) }
 0x134   : > { %v703_v16 = vld [vmem:[%s1183_s27 + $0x20] sm:$0xff]  ;;  %702 = vst [vmem:[%s682_s4 + $0x48] sm:$0xff] %v701_v15  ;;  %718 = vst [vmem:[%s682_s4 + $0x148] sm:$0xff] %v717_v23 }
 0x135   : > { %704 = vst [vmem:[%s682_s4 + $0x80] sm:$0xff] %v703_v16  ;;  %v719_v24 = vld [vmem:[%s1183_s27 + $0x60] sm:$0xff] }
 0x136   : > { %v705_v17 = vld [vmem:[%s1183_s27 + $0x28] sm:$0xff]  ;;  %720 = vst [vmem:[%s682_s4 + $0x180] sm:$0xff] %v719_v24 }
 0x137   : > { %706 = vst [vmem:[%s682_s4 + $0x88] sm:$0xff] %v705_v17  ;;  %v721_v25 = vld [vmem:[%s1183_s27 + $0x68] sm:$0xff] }
 0x138   : > { %v707_v18 = vld [vmem:[%s1183_s27 + $0x30] sm:$0xff]  ;;  %722 = vst [vmem:[%s682_s4 + $0x188] sm:$0xff] %v721_v25 }
 0x139   : > { %708 = vst [vmem:[%s682_s4 + $0xc0] sm:$0xff] %v707_v18  ;;  %v723_v26 = vld [vmem:[%s1183_s27 + $0x70] sm:$0xff] }
 0x13a   : > { %v709_v19 = vld [vmem:[%s1183_s27 + $0x38] sm:$0xff]  ;;  %724 = vst [vmem:[%s682_s4 + $0x1c0] sm:$0xff] %v723_v26 }
 0x13b   : > { %710 = vst [vmem:[%s682_s4 + $0xc8] sm:$0xff] %v709_v19  ;;  %v725_v27 = vld [vmem:[%s1183_s27 + $0x78] sm:$0xff] }
 0x13c   : > { %726 = vst [vmem:[%s682_s4 + $0x1c8] sm:$0xff] %v725_v27 }
 0x13d PF: > { %s14_s16 = sadd.s32 1, %s1035_s16   ;;  %s1247_s12 = smov %s1023_s13 }
 0x13e   : > { %p11_p9 = scmp.ge.s32.totalorder %s14_s16, 6   ;;  %s1248_s13 = smov %s1107_s23 }
 0x13f   : > { %s1249_s14 = smov %s1031_s15  ;;  %s1250_s15 = smov %s1252_s18 }
 0x140   :  { %13 = sbr.rel (!%p11_p9) target bundleno = 3 (0x3), region = 145 }
 0x145   :  { %742 = vsyncpa [#allocation4], 1 }
 0x146   :  { %744 = vsyncpa [#allocation4 + $0x1], 1 }

// kernel: upsample_forward.3
= control target key start
LH: loop header
LB: loop body
LE: loop exit
PB: predicated region body
PF: predicated region fallthrough
CT: control target
= control target key end

     0   :  { %s1180_s12 = smov 0   ;;  %s1182_s13 = smov 0   ;;  %s1330_s0 = inlined_call_operand.vmem [shape: bf16[512,128], index: 0, kind: input, shape index: {}]   ;;  %s1331_s1 = inlined_call_operand.vmem [shape: bf16[128,128], index: 1, kind: input, shape index: {}]   ;;  %s1332_s2 = inlined_call_operand.vmem [shape: f32[1,128], index: 2, kind: input, shape index: {}]   ;;  %s1333_s3 = inlined_call_operand.vmem [shape: f32[512,128], index: 3, kind: output, shape index: {}]  }
   0x1   :  { %s1184_s14 = smov 0  }
   0x2 LB: > { %s32_s15 = sadd.s32 1, %s1154_s13  ;;  %p968_p0 = scmp.ge.s32.totalorder %s1158_s14, 1  ;;  %s1158_s14 = sphi %s1184_s14, %s13_s14   ;;  %s1154_s13 = sphi %s1182_s13, %s1335_s13   ;;  %s1150_s12 = sphi %s1180_s12, %s1334_s12  }
   0x3   : > { %p34_p1 = scmp.ge.s32.totalorder %s32_s15, 2  ;;  %p188_p2 = scmp.lt.s32.totalorder %s1158_s14, 3 }
   0x5   : > { %s1337_s15 = smov (%p34_p1, %s32_s15), 0  ;;  %p189_p3 = pnand %p968_p0, %p188_p2 }
   0x6   : > { %s969_s18 = sshll.u32 (!%p189_p3), %s1150_s12, 5 }
   0x7   : > { %192 = sbr.rel (%p189_p3) target bundleno = 271 (0x10f), region = 32  ;;  %p230_p4 = scmp.lt.s32.totalorder (!%p189_p3), %s969_s18, 63 }
   0xc   : > { %v1112_v0 = vld [vmem:[%s1331_s1 + $0x38] sm:$0xff]   ;;  %v1113_v1 = vld [vmem:[%s1331_s1 + $0x30] sm:$0xff]   ;;  %s1339_s18 = smov (!%p230_p4, %s969_s18), 63  ;;  %v1114_v2 = vld [vmem:[%s1331_s1 + $0x28] sm:$0xff]  }
   0xd   : > { %1024 = vmatprep.subr.bf16.mxu0 %v1112_v0  ;;  %1072 = vmatprep.subr.bf16.mxu1 %v1112_v0  ;;  %s970_s23 = sshll.u32 %s1339_s18, 2  ;;  %v1115_v3 = vld [vmem:[%s1331_s1 + $0x20] sm:$0xff]   ;;  %v1116_v6 = vld [vmem:[%s1331_s1 + $0x18] sm:$0xff]   ;;  %v1117_v7 = vld [vmem:[%s1331_s1 + $0x10] sm:$0xff]   ;;  %s972_s10 = sshll.u32 %s1339_s18, 3 }
   0xe   : > { %1025 = vmatpush3.bf16.msra.mxu0 %v1112_v0  ;;  %1080 = vmatpush3.bf16.msra.mxu1 %v1112_v0  ;;  %s1213_s26 = scalar_lea.vmem %s1330_s0, %s970_s23  ;;  %v1118_v8 = vld [vmem:[%s1331_s1 + $0x8] sm:$0xff]   ;;  %v1119_v9 = vld [vmem:[%s1331_s1] sm:$0xff]   ;;  %s1255_s19 = scalar_lea.vmem %s1333_s3, %s972_s10 }
   0xf   : > { %1026 = vmatprep.subr.bf16.mxu0 %v1113_v1  ;;  %1073 = vmatprep.subr.bf16.mxu1 %v1113_v1  ;;  %v1120_v4 = vld [vmem:[%s1213_s26] sm:$0xff]   ;;  %v1122_v10 = vld [vmem:[%s1213_s26 + $0x8] sm:$0xff]   ;;  %v1124_v12 = vld [vmem:[%s1213_s26 + $0x10] sm:$0xff]  }
  0x10   : > { %v1121_v5 = vld [vmem:[%s1213_s26 + $0x40] sm:$0xff]   ;;  %1040 = vmatprep.mubr.bf16.mxu0 %v1120_v4  ;;  %v1123_v11 = vld [vmem:[%s1213_s26 + $0x48] sm:$0xff]   ;;  %v1125_v13 = vld [vmem:[%s1213_s26 + $0x50] sm:$0xff]  }
  0x11   : > { %1056 = vmatprep.mubr.bf16.mxu1 %v1121_v5  ;;  %v1126_v14 = vld [vmem:[%s1213_s26 + $0x18] sm:$0xff]   ;;  %v1128_v16 = vld [vmem:[%s1213_s26 + $0x20] sm:$0xff]   ;;  %v1130_v18 = vld [vmem:[%s1213_s26 + $0x28] sm:$0xff]  }
  0x12   : > { %1027 = vmatpush3.bf16.msra.mxu0 %v1113_v1  ;;  %1081 = vmatpush3.bf16.msra.mxu1 %v1113_v1  ;;  %v1127_v15 = vld [vmem:[%s1213_s26 + $0x58] sm:$0xff]   ;;  %v1129_v17 = vld [vmem:[%s1213_s26 + $0x60] sm:$0xff]   ;;  %v1131_v19 = vld [vmem:[%s1213_s26 + $0x68] sm:$0xff]  }
  0x13   : > { %1028 = vmatprep.subr.bf16.mxu0 %v1114_v2  ;;  %1074 = vmatprep.subr.bf16.mxu1 %v1114_v2  ;;  %v1132_v20 = vld [vmem:[%s1213_s26 + $0x30] sm:$0xff]   ;;  %v1134_v22 = vld [vmem:[%s1213_s26 + $0x38] sm:$0xff]   ;;  %v1250_v24 = vld [vmem:[%s1332_s2] ss:$0 sm:$0xff] }
  0x14   : > { %v1133_v21 = vld [vmem:[%s1213_s26 + $0x70] sm:$0xff]   ;;  %v1135_v23 = vld [vmem:[%s1213_s26 + $0x78] sm:$0xff]  }
  0x16   : > { %1029 = vmatpush3.bf16.msra.mxu0 %v1114_v2  ;;  %1082 = vmatpush3.bf16.msra.mxu1 %v1114_v2 }
  0x17   : > { %1030 = vmatprep.subr.bf16.mxu0 %v1115_v3  ;;  %1075 = vmatprep.subr.bf16.mxu1 %v1115_v3 }
  0x1a   : > { %1031 = vmatpush3.bf16.msra.mxu0 %v1115_v3  ;;  %1083 = vmatpush3.bf16.msra.mxu1 %v1115_v3 }
  0x1b   : > { %1032 = vmatprep.subr.bf16.mxu0 %v1116_v6  ;;  %1076 = vmatprep.subr.bf16.mxu1 %v1116_v6 }
  0x1e   : > { %1033 = vmatpush3.bf16.msra.mxu0 %v1116_v6  ;;  %1084 = vmatpush3.bf16.msra.mxu1 %v1116_v6 }
  0x1f   : > { %1034 = vmatprep.subr.bf16.mxu0 %v1117_v7  ;;  %1077 = vmatprep.subr.bf16.mxu1 %v1117_v7 }
  0x22   : > { %1035 = vmatpush3.bf16.msra.mxu0 %v1117_v7  ;;  %1085 = vmatpush3.bf16.msra.mxu1 %v1117_v7 }
  0x23   : > { %1036 = vmatprep.subr.bf16.mxu0 %v1118_v8  ;;  %1078 = vmatprep.subr.bf16.mxu1 %v1118_v8 }
  0x26   : > { %1037 = vmatpush3.bf16.msra.mxu0 %v1118_v8  ;;  %1086 = vmatpush3.bf16.msra.mxu1 %v1118_v8 }
  0x27   : > { %1038 = vmatprep.subr.bf16.mxu0 %v1119_v9  ;;  %1079 = vmatprep.subr.bf16.mxu1 %v1119_v9 }
  0x2a   : > { %1039 = vmatpush3.bf16.msra.mxu0 %v1119_v9  ;;  %1087 = vmatpush3.bf16.msra.mxu1 %v1119_v9 }
  0x2d   : > { %1041 = vmatmul.mubr.bf16.vlgmr.msra.gmra.mxu0 %v1122_v10  ;;  %1057 = vmatmul.mubr.bf16.vlgmr.msra.gmra.mxu1 %v1123_v11 }
  0x2e   : > { %1044 = vmatprep.mubr.bf16.mxu0 %v1124_v12  ;;  %1060 = vmatprep.mubr.bf16.mxu1 %v1125_v13 }
  0x35   : > { %1045 = vmatmul.mubr.bf16.gmra.mxu0 %v1126_v14  ;;  %1061 = vmatmul.mubr.bf16.gmra.mxu1 %v1127_v15 }
  0x36   : > { %1048 = vmatprep.mubr.bf16.mxu0 %v1128_v16  ;;  %1064 = vmatprep.mubr.bf16.mxu1 %v1129_v17 }
  0x3d   : > { %1049 = vmatmul.mubr.bf16.gmra.mxu0 %v1130_v18  ;;  %1065 = vmatmul.mubr.bf16.gmra.mxu1 %v1131_v19 }
  0x3e   : > { %1052 = vmatprep.mubr.bf16.mxu0 %v1132_v20  ;;  %1068 = vmatprep.mubr.bf16.mxu1 %v1133_v21 }
  0x45   : > { %1053 = vmatmul.mubr.bf16.gmra.mxu0 %v1134_v22  ;;  %1069 = vmatmul.mubr.bf16.gmra.mxu1 %v1135_v23 }
  0xed   : > { %v1042_v25 = vpop.f32.mrf.mxu0  ;;  %v1058_v26 = vpop.f32.mrf.mxu1 }
  0xee   : > { %v789_v27 = vadd.f32 %v1042_v25, %v1250_v24  ;;  %v805_v28 = vadd.f32 %v1058_v26, %v1250_v24 }
  0xef   : > { %v554_v29 = vpop.f32.mrf.mxu0  ;;  %v618_v30 = vpop.f32.mrf.mxu1 }
  0xf0   : > { %821 = vst [vmem:[%s1255_s19 + $0x10] sm:$0xff] %v789_v27  ;;  %837 = vst [vmem:[%s1255_s19 + $0x90] sm:$0xff] %v805_v28  ;;  %v787_v31 = vadd.f32 %v1250_v24, %v554_v29  ;;  %v803_v32 = vadd.f32 %v1250_v24, %v618_v30 }
  0xf1   : > { %v1043_v33 = vpop.f32.mrf.mxu0  ;;  %v1059_v34 = vpop.f32.mrf.mxu1 }
  0xf2   : > { %819 = vst [vmem:[%s1255_s19] sm:$0xff] %v787_v31  ;;  %835 = vst [vmem:[%s1255_s19 + $0x80] sm:$0xff] %v803_v32  ;;  %v790_v35 = vadd.f32 %v1043_v33, %v1250_v24  ;;  %v806_v36 = vadd.f32 %v1059_v34, %v1250_v24 }
  0xf3   : > { %v557_v37 = vpop.f32.mrf.mxu0  ;;  %v621_v38 = vpop.f32.mrf.mxu1 }
  0xf4   : > { %822 = vst [vmem:[%s1255_s19 + $0x18] sm:$0xff] %v790_v35  ;;  %838 = vst [vmem:[%s1255_s19 + $0x98] sm:$0xff] %v806_v36  ;;  %v788_v39 = vadd.f32 %v1250_v24, %v557_v37  ;;  %v804_v40 = vadd.f32 %v1250_v24, %v621_v38 }
  0xf5   : > { %v1046_v41 = vpop.f32.mrf.mxu0  ;;  %v1062_v42 = vpop.f32.mrf.mxu1 }
  0xf6   : > { %820 = vst [vmem:[%s1255_s19 + $0x8] sm:$0xff] %v788_v39  ;;  %836 = vst [vmem:[%s1255_s19 + $0x88] sm:$0xff] %v804_v40  ;;  %v793_v43 = vadd.f32 %v1046_v41, %v1250_v24  ;;  %v809_v44 = vadd.f32 %v1062_v42, %v1250_v24 }
  0xf7   : > { %v570_v45 = vpop.f32.mrf.mxu0  ;;  %v634_v46 = vpop.f32.mrf.mxu1 }
  0xf8   : > { %825 = vst [vmem:[%s1255_s19 + $0x30] sm:$0xff] %v793_v43  ;;  %841 = vst [vmem:[%s1255_s19 + $0xb0] sm:$0xff] %v809_v44  ;;  %v791_v47 = vadd.f32 %v1250_v24, %v570_v45  ;;  %v807_v48 = vadd.f32 %v1250_v24, %v634_v46 }
  0xf9   : > { %v1047_v49 = vpop.f32.mrf.mxu0  ;;  %v1063_v50 = vpop.f32.mrf.mxu1 }
  0xfa   : > { %823 = vst [vmem:[%s1255_s19 + $0x20] sm:$0xff] %v791_v47  ;;  %839 = vst [vmem:[%s1255_s19 + $0xa0] sm:$0xff] %v807_v48  ;;  %v794_v51 = vadd.f32 %v1047_v49, %v1250_v24  ;;  %v810_v52 = vadd.f32 %v1063_v50, %v1250_v24 }
  0xfb   : > { %v573_v53 = vpop.f32.mrf.mxu0  ;;  %v637_v54 = vpop.f32.mrf.mxu1 }
  0xfc   : > { %826 = vst [vmem:[%s1255_s19 + $0x38] sm:$0xff] %v794_v51  ;;  %842 = vst [vmem:[%s1255_s19 + $0xb8] sm:$0xff] %v810_v52  ;;  %v792_v55 = vadd.f32 %v1250_v24, %v573_v53  ;;  %v808_v56 = vadd.f32 %v1250_v24, %v637_v54 }
  0xfd   : > { %v1050_v57 = vpop.f32.mrf.mxu0  ;;  %v1066_v58 = vpop.f32.mrf.mxu1 }
  0xfe   : > { %824 = vst [vmem:[%s1255_s19 + $0x28] sm:$0xff] %v792_v55  ;;  %840 = vst [vmem:[%s1255_s19 + $0xa8] sm:$0xff] %v808_v56  ;;  %v797_v59 = vadd.f32 %v1050_v57, %v1250_v24  ;;  %v813_v60 = vadd.f32 %v1066_v58, %v1250_v24 }
  0xff   : > { %v586_v61 = vpop.f32.mrf.mxu0  ;;  %v650_v62 = vpop.f32.mrf.mxu1 }
 0x100   : > { %829 = vst [vmem:[%s1255_s19 + $0x50] sm:$0xff] %v797_v59  ;;  %845 = vst [vmem:[%s1255_s19 + $0xd0] sm:$0xff] %v813_v60  ;;  %v795_v63 = vadd.f32 %v1250_v24, %v586_v61  ;;  %v811_v0 = vadd.f32 %v1250_v24, %v650_v62 }
 0x101   : > { %v1051_v1 = vpop.f32.mrf.mxu0  ;;  %v1067_v2 = vpop.f32.mrf.mxu1 }
 0x102   : > { %827 = vst [vmem:[%s1255_s19 + $0x40] sm:$0xff] %v795_v63  ;;  %843 = vst [vmem:[%s1255_s19 + $0xc0] sm:$0xff] %v811_v0  ;;  %v798_v3 = vadd.f32 %v1051_v1, %v1250_v24  ;;  %v814_v4 = vadd.f32 %v1067_v2, %v1250_v24 }
 0x103   : > { %v589_v5 = vpop.f32.mrf.mxu0  ;;  %v653_v6 = vpop.f32.mrf.mxu1 }
 0x104   : > { %830 = vst [vmem:[%s1255_s19 + $0x58] sm:$0xff] %v798_v3  ;;  %846 = vst [vmem:[%s1255_s19 + $0xd8] sm:$0xff] %v814_v4  ;;  %v796_v7 = vadd.f32 %v1250_v24, %v589_v5  ;;  %v812_v8 = vadd.f32 %v1250_v24, %v653_v6 }
 0x105   : > { %v1054_v9 = vpop.f32.mrf.mxu0  ;;  %v1070_v10 = vpop.f32.mrf.mxu1 }
 0x106   : > { %828 = vst [vmem:[%s1255_s19 + $0x48] sm:$0xff] %v796_v7  ;;  %844 = vst [vmem:[%s1255_s19 + $0xc8] sm:$0xff] %v812_v8  ;;  %v801_v11 = vadd.f32 %v1054_v9, %v1250_v24  ;;  %v817_v12 = vadd.f32 %v1070_v10, %v1250_v24 }
 0x107   : > { %v602_v13 = vpop.f32.mrf.mxu0  ;;  %v666_v14 = vpop.f32.mrf.mxu1 }
 0x108   : > { %833 = vst [vmem:[%s1255_s19 + $0x70] sm:$0xff] %v801_v11  ;;  %849 = vst [vmem:[%s1255_s19 + $0xf0] sm:$0xff] %v817_v12  ;;  %v799_v15 = vadd.f32 %v1250_v24, %v602_v13  ;;  %v815_v16 = vadd.f32 %v1250_v24, %v666_v14 }
 0x109   : > { %v1055_v17 = vpop.f32.mrf.mxu0  ;;  %v1071_v18 = vpop.f32.mrf.mxu1 }
 0x10a   : > { %831 = vst [vmem:[%s1255_s19 + $0x60] sm:$0xff] %v799_v15  ;;  %847 = vst [vmem:[%s1255_s19 + $0xe0] sm:$0xff] %v815_v16  ;;  %v802_v19 = vadd.f32 %v1055_v17, %v1250_v24  ;;  %v818_v20 = vadd.f32 %v1071_v18, %v1250_v24 }
 0x10b   : > { %v605_v21 = vpop.f32.mrf.mxu0  ;;  %v669_v22 = vpop.f32.mrf.mxu1 }
 0x10c   : > { %834 = vst [vmem:[%s1255_s19 + $0x78] sm:$0xff] %v802_v19  ;;  %850 = vst [vmem:[%s1255_s19 + $0xf8] sm:$0xff] %v818_v20  ;;  %v800_v23 = vadd.f32 %v1250_v24, %v605_v21  ;;  %v816_v25 = vadd.f32 %v1250_v24, %v669_v22 }
 0x10e   : > { %832 = vst [vmem:[%s1255_s19 + $0x68] sm:$0xff] %v800_v23  ;;  %848 = vst [vmem:[%s1255_s19 + $0xe8] sm:$0xff] %v816_v25 }
 0x10f PF: > { %s13_s14 = sadd.s32 1, %s1158_s14   ;;  %s1334_s12 = smov %s1154_s13 }
 0x110   : > { %p10_p5 = scmp.ge.s32.totalorder %s13_s14, 4   ;;  %s1335_s13 = smov %s1337_s15 }
 0x112   :  { %12 = sbr.rel (!%p10_p5) target bundleno = 2 (0x2), region = 76 }

// kernel: upsample_forward.5
= control target key start
LH: loop header
LB: loop body
LE: loop exit
PB: predicated region body
PF: predicated region fallthrough
CT: control target
= control target key end

     0   :  { %s1180_s12 = smov 0   ;;  %s1182_s13 = smov 0   ;;  %s1330_s0 = inlined_call_operand.vmem [shape: bf16[4096,128], index: 0, kind: input, shape index: {}]   ;;  %s1331_s1 = inlined_call_operand.vmem [shape: bf16[128,128], index: 1, kind: input, shape index: {}]   ;;  %s1332_s2 = inlined_call_operand.vmem [shape: f32[1,128], index: 2, kind: input, shape index: {}]   ;;  %s1333_s3 = inlined_call_operand.vmem [shape: f32[4096,128], index: 3, kind: output, shape index: {}]  }
   0x1   :  { %s1184_s14 = smov 0  }
   0x2 LB: > { %s32_s15 = sadd.s32 1, %s1154_s13  ;;  %p968_p0 = scmp.ge.s32.totalorder %s1158_s14, 1  ;;  %s1158_s14 = sphi %s1184_s14, %s13_s14   ;;  %s1154_s13 = sphi %s1182_s13, %s1335_s13   ;;  %s1150_s12 = sphi %s1180_s12, %s1334_s12  }
   0x3   : > { %p34_p1 = scmp.ge.s32.totalorder %s32_s15, 16  ;;  %p188_p2 = scmp.lt.s32.totalorder %s1158_s14, 17 }
   0x5   : > { %s1337_s15 = smov (%p34_p1, %s32_s15), 0  ;;  %p189_p3 = pnand %p968_p0, %p188_p2 }
   0x6   : > { %s969_s18 = sshll.u32 (!%p189_p3), %s1150_s12, 5 }
   0x7   : > { %192 = sbr.rel (%p189_p3) target bundleno = 271 (0x10f), region = 32  ;;  %p230_p4 = scmp.lt.s32.totalorder (!%p189_p3), %s969_s18, 511 }
   0xc   : > { %v1112_v0 = vld [vmem:[%s1331_s1 + $0x38] sm:$0xff]   ;;  %v1113_v1 = vld [vmem:[%s1331_s1 + $0x30] sm:$0xff]   ;;  %s1339_s18 = smov (!%p230_p4, %s969_s18), 511  ;;  %v1114_v2 = vld [vmem:[%s1331_s1 + $0x28] sm:$0xff]  }
   0xd   : > { %1024 = vmatprep.subr.bf16.mxu0 %v1112_v0  ;;  %1072 = vmatprep.subr.bf16.mxu1 %v1112_v0  ;;  %s970_s23 = sshll.u32 %s1339_s18, 2  ;;  %v1115_v3 = vld [vmem:[%s1331_s1 + $0x20] sm:$0xff]   ;;  %v1116_v6 = vld [vmem:[%s1331_s1 + $0x18] sm:$0xff]   ;;  %v1117_v7 = vld [vmem:[%s1331_s1 + $0x10] sm:$0xff]   ;;  %s972_s10 = sshll.u32 %s1339_s18, 3 }
   0xe   : > { %1025 = vmatpush3.bf16.msra.mxu0 %v1112_v0  ;;  %1080 = vmatpush3.bf16.msra.mxu1 %v1112_v0  ;;  %s1213_s26 = scalar_lea.vmem %s1330_s0, %s970_s23  ;;  %v1118_v8 = vld [vmem:[%s1331_s1 + $0x8] sm:$0xff]   ;;  %v1119_v9 = vld [vmem:[%s1331_s1] sm:$0xff]   ;;  %s1255_s19 = scalar_lea.vmem %s1333_s3, %s972_s10 }
   0xf   : > { %1026 = vmatprep.subr.bf16.mxu0 %v1113_v1  ;;  %1073 = vmatprep.subr.bf16.mxu1 %v1113_v1  ;;  %v1120_v4 = vld [vmem:[%s1213_s26] sm:$0xff]   ;;  %v1122_v10 = vld [vmem:[%s1213_s26 + $0x8] sm:$0xff]   ;;  %v1124_v12 = vld [vmem:[%s1213_s26 + $0x10] sm:$0xff]  }
  0x10   : > { %v1121_v5 = vld [vmem:[%s1213_s26 + $0x40] sm:$0xff]   ;;  %1040 = vmatprep.mubr.bf16.mxu0 %v1120_v4  ;;  %v1123_v11 = vld [vmem:[%s1213_s26 + $0x48] sm:$0xff]   ;;  %v1125_v13 = vld [vmem:[%s1213_s26 + $0x50] sm:$0xff]  }
  0x11   : > { %1056 = vmatprep.mubr.bf16.mxu1 %v1121_v5  ;;  %v1126_v14 = vld [vmem:[%s1213_s26 + $0x18] sm:$0xff]   ;;  %v1128_v16 = vld [vmem:[%s1213_s26 + $0x20] sm:$0xff]   ;;  %v1130_v18 = vld [vmem:[%s1213_s26 + $0x28] sm:$0xff]  }
  0x12   : > { %1027 = vmatpush3.bf16.msra.mxu0 %v1113_v1  ;;  %1081 = vmatpush3.bf16.msra.mxu1 %v1113_v1  ;;  %v1127_v15 = vld [vmem:[%s1213_s26 + $0x58] sm:$0xff]   ;;  %v1129_v17 = vld [vmem:[%s1213_s26 + $0x60] sm:$0xff]   ;;  %v1131_v19 = vld [vmem:[%s1213_s26 + $0x68] sm:$0xff]  }
  0x13   : > { %1028 = vmatprep.subr.bf16.mxu0 %v1114_v2  ;;  %1074 = vmatprep.subr.bf16.mxu1 %v1114_v2  ;;  %v1132_v20 = vld [vmem:[%s1213_s26 + $0x30] sm:$0xff]   ;;  %v1134_v22 = vld [vmem:[%s1213_s26 + $0x38] sm:$0xff]   ;;  %v1250_v24 = vld [vmem:[%s1332_s2] ss:$0 sm:$0xff] }
  0x14   : > { %v1133_v21 = vld [vmem:[%s1213_s26 + $0x70] sm:$0xff]   ;;  %v1135_v23 = vld [vmem:[%s1213_s26 + $0x78] sm:$0xff]  }
  0x16   : > { %1029 = vmatpush3.bf16.msra.mxu0 %v1114_v2  ;;  %1082 = vmatpush3.bf16.msra.mxu1 %v1114_v2 }
  0x17   : > { %1030 = vmatprep.subr.bf16.mxu0 %v1115_v3  ;;  %1075 = vmatprep.subr.bf16.mxu1 %v1115_v3 }
  0x1a   : > { %1031 = vmatpush3.bf16.msra.mxu0 %v1115_v3  ;;  %1083 = vmatpush3.bf16.msra.mxu1 %v1115_v3 }
  0x1b   : > { %1032 = vmatprep.subr.bf16.mxu0 %v1116_v6  ;;  %1076 = vmatprep.subr.bf16.mxu1 %v1116_v6 }
  0x1e   : > { %1033 = vmatpush3.bf16.msra.mxu0 %v1116_v6  ;;  %1084 = vmatpush3.bf16.msra.mxu1 %v1116_v6 }
  0x1f   : > { %1034 = vmatprep.subr.bf16.mxu0 %v1117_v7  ;;  %1077 = vmatprep.subr.bf16.mxu1 %v1117_v7 }
  0x22   : > { %1035 = vmatpush3.bf16.msra.mxu0 %v1117_v7  ;;  %1085 = vmatpush3.bf16.msra.mxu1 %v1117_v7 }
  0x23   : > { %1036 = vmatprep.subr.bf16.mxu0 %v1118_v8  ;;  %1078 = vmatprep.subr.bf16.mxu1 %v1118_v8 }
  0x26   : > { %1037 = vmatpush3.bf16.msra.mxu0 %v1118_v8  ;;  %1086 = vmatpush3.bf16.msra.mxu1 %v1118_v8 }
  0x27   : > { %1038 = vmatprep.subr.bf16.mxu0 %v1119_v9  ;;  %1079 = vmatprep.subr.bf16.mxu1 %v1119_v9 }
  0x2a   : > { %1039 = vmatpush3.bf16.msra.mxu0 %v1119_v9  ;;  %1087 = vmatpush3.bf16.msra.mxu1 %v1119_v9 }
  0x2d   : > { %1041 = vmatmul.mubr.bf16.vlgmr.msra.gmra.mxu0 %v1122_v10  ;;  %1057 = vmatmul.mubr.bf16.vlgmr.msra.gmra.mxu1 %v1123_v11 }
  0x2e   : > { %1044 = vmatprep.mubr.bf16.mxu0 %v1124_v12  ;;  %1060 = vmatprep.mubr.bf16.mxu1 %v1125_v13 }
  0x35   : > { %1045 = vmatmul.mubr.bf16.gmra.mxu0 %v1126_v14  ;;  %1061 = vmatmul.mubr.bf16.gmra.mxu1 %v1127_v15 }
  0x36   : > { %1048 = vmatprep.mubr.bf16.mxu0 %v1128_v16  ;;  %1064 = vmatprep.mubr.bf16.mxu1 %v1129_v17 }
  0x3d   : > { %1049 = vmatmul.mubr.bf16.gmra.mxu0 %v1130_v18  ;;  %1065 = vmatmul.mubr.bf16.gmra.mxu1 %v1131_v19 }
  0x3e   : > { %1052 = vmatprep.mubr.bf16.mxu0 %v1132_v20  ;;  %1068 = vmatprep.mubr.bf16.mxu1 %v1133_v21 }
  0x45   : > { %1053 = vmatmul.mubr.bf16.gmra.mxu0 %v1134_v22  ;;  %1069 = vmatmul.mubr.bf16.gmra.mxu1 %v1135_v23 }
  0xed   : > { %v1042_v25 = vpop.f32.mrf.mxu0  ;;  %v1058_v26 = vpop.f32.mrf.mxu1 }
  0xee   : > { %v789_v27 = vadd.f32 %v1042_v25, %v1250_v24  ;;  %v805_v28 = vadd.f32 %v1058_v26, %v1250_v24 }
  0xef   : > { %v554_v29 = vpop.f32.mrf.mxu0  ;;  %v618_v30 = vpop.f32.mrf.mxu1 }
  0xf0   : > { %821 = vst [vmem:[%s1255_s19 + $0x10] sm:$0xff] %v789_v27  ;;  %837 = vst [vmem:[%s1255_s19 + $0x90] sm:$0xff] %v805_v28  ;;  %v787_v31 = vadd.f32 %v1250_v24, %v554_v29  ;;  %v803_v32 = vadd.f32 %v1250_v24, %v618_v30 }
  0xf1   : > { %v1043_v33 = vpop.f32.mrf.mxu0  ;;  %v1059_v34 = vpop.f32.mrf.mxu1 }
  0xf2   : > { %819 = vst [vmem:[%s1255_s19] sm:$0xff] %v787_v31  ;;  %835 = vst [vmem:[%s1255_s19 + $0x80] sm:$0xff] %v803_v32  ;;  %v790_v35 = vadd.f32 %v1043_v33, %v1250_v24  ;;  %v806_v36 = vadd.f32 %v1059_v34, %v1250_v24 }
  0xf3   : > { %v557_v37 = vpop.f32.mrf.mxu0  ;;  %v621_v38 = vpop.f32.mrf.mxu1 }
  0xf4   : > { %822 = vst [vmem:[%s1255_s19 + $0x18] sm:$0xff] %v790_v35  ;;  %838 = vst [vmem:[%s1255_s19 + $0x98] sm:$0xff] %v806_v36  ;;  %v788_v39 = vadd.f32 %v1250_v24, %v557_v37  ;;  %v804_v40 = vadd.f32 %v1250_v24, %v621_v38 }
  0xf5   : > { %v1046_v41 = vpop.f32.mrf.mxu0  ;;  %v1062_v42 = vpop.f32.mrf.mxu1 }
  0xf6   : > { %820 = vst [vmem:[%s1255_s19 + $0x8] sm:$0xff] %v788_v39  ;;  %836 = vst [vmem:[%s1255_s19 + $0x88] sm:$0xff] %v804_v40  ;;  %v793_v43 = vadd.f32 %v1046_v41, %v1250_v24  ;;  %v809_v44 = vadd.f32 %v1062_v42, %v1250_v24 }
  0xf7   : > { %v570_v45 = vpop.f32.mrf.mxu0  ;;  %v634_v46 = vpop.f32.mrf.mxu1 }
  0xf8   : > { %825 = vst [vmem:[%s1255_s19 + $0x30] sm:$0xff] %v793_v43  ;;  %841 = vst [vmem:[%s1255_s19 + $0xb0] sm:$0xff] %v809_v44  ;;  %v791_v47 = vadd.f32 %v1250_v24, %v570_v45  ;;  %v807_v48 = vadd.f32 %v1250_v24, %v634_v46 }
  0xf9   : > { %v1047_v49 = vpop.f32.mrf.mxu0  ;;  %v1063_v50 = vpop.f32.mrf.mxu1 }
  0xfa   : > { %823 = vst [vmem:[%s1255_s19 + $0x20] sm:$0xff] %v791_v47  ;;  %839 = vst [vmem:[%s1255_s19 + $0xa0] sm:$0xff] %v807_v48  ;;  %v794_v51 = vadd.f32 %v1047_v49, %v1250_v24  ;;  %v810_v52 = vadd.f32 %v1063_v50, %v1250_v24 }
  0xfb   : > { %v573_v53 = vpop.f32.mrf.mxu0  ;;  %v637_v54 = vpop.f32.mrf.mxu1 }
  0xfc   : > { %826 = vst [vmem:[%s1255_s19 + $0x38] sm:$0xff] %v794_v51  ;;  %842 = vst [vmem:[%s1255_s19 + $0xb8] sm:$0xff] %v810_v52  ;;  %v792_v55 = vadd.f32 %v1250_v24, %v573_v53  ;;  %v808_v56 = vadd.f32 %v1250_v24, %v637_v54 }
  0xfd   : > { %v1050_v57 = vpop.f32.mrf.mxu0  ;;  %v1066_v58 = vpop.f32.mrf.mxu1 }
  0xfe   : > { %824 = vst [vmem:[%s1255_s19 + $0x28] sm:$0xff] %v792_v55  ;;  %840 = vst [vmem:[%s1255_s19 + $0xa8] sm:$0xff] %v808_v56  ;;  %v797_v59 = vadd.f32 %v1050_v57, %v1250_v24  ;;  %v813_v60 = vadd.f32 %v1066_v58, %v1250_v24 }
  0xff   : > { %v586_v61 = vpop.f32.mrf.mxu0  ;;  %v650_v62 = vpop.f32.mrf.mxu1 }
 0x100   : > { %829 = vst [vmem:[%s1255_s19 + $0x50] sm:$0xff] %v797_v59  ;;  %845 = vst [vmem:[%s1255_s19 + $0xd0] sm:$0xff] %v813_v60  ;;  %v795_v63 = vadd.f32 %v1250_v24, %v586_v61  ;;  %v811_v0 = vadd.f32 %v1250_v24, %v650_v62 }
 0x101   : > { %v1051_v1 = vpop.f32.mrf.mxu0  ;;  %v1067_v2 = vpop.f32.mrf.mxu1 }
 0x102   : > { %827 = vst [vmem:[%s1255_s19 + $0x40] sm:$0xff] %v795_v63  ;;  %843 = vst [vmem:[%s1255_s19 + $0xc0] sm:$0xff] %v811_v0  ;;  %v798_v3 = vadd.f32 %v1051_v1, %v1250_v24  ;;  %v814_v4 = vadd.f32 %v1067_v2, %v1250_v24 }
 0x103   : > { %v589_v5 = vpop.f32.mrf.mxu0  ;;  %v653_v6 = vpop.f32.mrf.mxu1 }
 0x104   : > { %830 = vst [vmem:[%s1255_s19 + $0x58] sm:$0xff] %v798_v3  ;;  %846 = vst [vmem:[%s1255_s19 + $0xd8] sm:$0xff] %v814_v4  ;;  %v796_v7 = vadd.f32 %v1250_v24, %v589_v5  ;;  %v812_v8 = vadd.f32 %v1250_v24, %v653_v6 }
 0x105   : > { %v1054_v9 = vpop.f32.mrf.mxu0  ;;  %v1070_v10 = vpop.f32.mrf.mxu1 }
 0x106   : > { %828 = vst [vmem:[%s1255_s19 + $0x48] sm:$0xff] %v796_v7  ;;  %844 = vst [vmem:[%s1255_s19 + $0xc8] sm:$0xff] %v812_v8  ;;  %v801_v11 = vadd.f32 %v1054_v9, %v1250_v24  ;;  %v817_v12 = vadd.f32 %v1070_v10, %v1250_v24 }
 0x107   : > { %v602_v13 = vpop.f32.mrf.mxu0  ;;  %v666_v14 = vpop.f32.mrf.mxu1 }
 0x108   : > { %833 = vst [vmem:[%s1255_s19 + $0x70] sm:$0xff] %v801_v11  ;;  %849 = vst [vmem:[%s1255_s19 + $0xf0] sm:$0xff] %v817_v12  ;;  %v799_v15 = vadd.f32 %v1250_v24, %v602_v13  ;;  %v815_v16 = vadd.f32 %v1250_v24, %v666_v14 }
 0x109   : > { %v1055_v17 = vpop.f32.mrf.mxu0  ;;  %v1071_v18 = vpop.f32.mrf.mxu1 }
 0x10a   : > { %831 = vst [vmem:[%s1255_s19 + $0x60] sm:$0xff] %v799_v15  ;;  %847 = vst [vmem:[%s1255_s19 + $0xe0] sm:$0xff] %v815_v16  ;;  %v802_v19 = vadd.f32 %v1055_v17, %v1250_v24  ;;  %v818_v20 = vadd.f32 %v1071_v18, %v1250_v24 }
 0x10b   : > { %v605_v21 = vpop.f32.mrf.mxu0  ;;  %v669_v22 = vpop.f32.mrf.mxu1 }
 0x10c   : > { %834 = vst [vmem:[%s1255_s19 + $0x78] sm:$0xff] %v802_v19  ;;  %850 = vst [vmem:[%s1255_s19 + $0xf8] sm:$0xff] %v818_v20  ;;  %v800_v23 = vadd.f32 %v1250_v24, %v605_v21  ;;  %v816_v25 = vadd.f32 %v1250_v24, %v669_v22 }
 0x10e   : > { %832 = vst [vmem:[%s1255_s19 + $0x68] sm:$0xff] %v800_v23  ;;  %848 = vst [vmem:[%s1255_s19 + $0xe8] sm:$0xff] %v816_v25 }
 0x10f PF: > { %s13_s14 = sadd.s32 1, %s1158_s14   ;;  %s1334_s12 = smov %s1154_s13 }
 0x110   : > { %p10_p5 = scmp.ge.s32.totalorder %s13_s14, 18   ;;  %s1335_s13 = smov %s1337_s15 }
 0x112   :  { %12 = sbr.rel (!%p10_p5) target bundleno = 2 (0x2), region = 76 }

</bundles_post_ra>
